<compile_context>
chip_gen: v7x
topology: tpu7x:2x2x1
jax: 0.10.0
libtpu: 0.0.40
codegen_flags: <defaults>
</compile_context>

<pallas_src>
import jax
import jax.numpy as jnp
from jax import lax
from jax.experimental import pallas as pl
from jax.experimental.pallas import tpu as pltpu

_MIB = 1024 * 1024


def _round_up(x: int, m: int) -> int:
    return ((x + m - 1) // m) * m


def _pad2d(a, rows: int, cols: int):
    pr, pc = rows - a.shape[0], cols - a.shape[1]
    if pr or pc:
        a = jnp.pad(a, ((0, pr), (0, pc)))
    return a


def _vmem_capacity() -> int:
    try:
        return int(pltpu.get_tpu_info().vmem_capacity_bytes)
    except Exception:
        return 64 * _MIB  # conservative fallback = v7x per-TensorCore VMEM


def _ffn_resident_kernel(x_ref, w1_ref, b1_ref, w2_ref, b2_ref, o_ref):
    """Weights resident in VMEM; grid = (token tiles,).

    Weight refs are pre-chunked along d_ff:
      w1_ref: (n_chunks, dm_pad, ff_chunk)
      b1_ref: (n_chunks, 1, ff_chunk)        (f32)
      w2_ref: (n_chunks, ff_chunk, dm_pad)
    so the f32 hidden temporary is bounded to (tm, ff_chunk).
    """
    x = x_ref[...]
    tm = x.shape[0]
    n_chunks = w1_ref.shape[0]
    dm_out = w2_ref.shape[2]

    def chunk(w1c, b1c, w2c):
        h = jnp.dot(x, w1c, preferred_element_type=jnp.float32)
        h = jnp.maximum(h + b1c, 0.0)                       # bias + ReLU in f32
        return jnp.dot(h.astype(w2c.dtype), w2c,
                       preferred_element_type=jnp.float32)

    if n_chunks == 1:
        acc = chunk(w1_ref[0], b1_ref[0], w2_ref[0])
    else:
        def body(c, acc):
            return acc + chunk(w1_ref[c], b1_ref[c], w2_ref[c])

        acc = lax.fori_loop(0, n_chunks, body,
                            jnp.zeros((tm, dm_out), jnp.float32))

    o_ref[...] = (acc + b2_ref[...]).astype(o_ref.dtype)


def _ffn_streamed_kernel(x_ref, w1_ref, b1_ref, w2_ref, b2_ref, o_ref, acc_ref):
    """d_ff streamed in tiles; grid = (token tiles, d_ff tiles)."""
    k = pl.program_id(1)

    @pl.when(k == 0)
    def _init():
        acc_ref[...] = jnp.zeros_like(acc_ref)

    x = x_ref[...]
    h = jnp.dot(x, w1_ref[...], preferred_element_type=jnp.float32)
    h = jnp.maximum(h + b1_ref[...], 0.0)                   # bias + ReLU in f32
    acc_ref[...] += jnp.dot(h.astype(w2_ref.dtype), w2_ref[...],
                            preferred_element_type=jnp.float32)

    @pl.when(k == pl.num_programs(1) - 1)
    def _finalize():
        o_ref[...] = (acc_ref[...] + b2_ref[...]).astype(o_ref.dtype)


def feed_forward(x, w1, b1, w2, b2, *, tm=None, tff=None, ff_chunk=None,
                 compute_dtype=jnp.bfloat16, resident_weights=None):
    """x: (B, S, d_model) -> (B, S, d_model).  Dropout = inference identity.

    tm:            token-row tile (default 512; sweep 512/1024).
    tff:           d_ff tile for the streaming path (multiple of 128).
    ff_chunk:      in-kernel d_ff slice on the resident path (bounds f32 hidden).
    compute_dtype: MXU operand dtype (default bf16; None keeps input dtype).
    resident_weights: force resident/streamed weights; None = auto by VMEM fit.
    """
    B, S, d_model = x.shape
    d_ff = w1.shape[1]
    assert w1.shape == (d_model, d_ff)
    assert w2.shape == (d_ff, d_model)
    assert b1.shape == (d_ff,) and b2.shape == (d_model,)

    out_dtype = x.dtype
    M = B * S

    if compute_dtype is not None:
        x = x.astype(compute_dtype)
        w1 = w1.astype(compute_dtype)
        w2 = w2.astype(compute_dtype)
    # Biases stay f32 so bias + ReLU run in f32 before the final cast.
    b1 = b1.astype(jnp.float32)
    b2 = b2.astype(jnp.float32)

    vmem_cap = _vmem_capacity()
    large_vmem = vmem_cap >= 96 * _MIB       # v5e/v6e: 128 MiB; v7x: 64 MiB / TC

    # --- tile / padding geometry -------------------------------------------
    dm_pad = _round_up(d_model, 128)         # lane-dense -> unmasked vst
    dff128 = _round_up(d_ff, 128)

    if tm is None:
        tm = 512                             # sweep 512/1024 per generation
    tm = min(_round_up(tm, 16), _round_up(M, 16))   # 16-row mult: f32 & bf16 safe

    if tff is None:
        tff = 1024 if large_vmem else 512
    tff = max(128, min(_round_up(tff, 128), dff128))

    if ff_chunk is None:
        ff_chunk = 2048 if large_vmem else 1024
    ff_chunk = max(128, _round_up(ff_chunk, 128))

    xbytes = jnp.dtype(x.dtype).itemsize
    wbytes = jnp.dtype(w1.dtype).itemsize
    obytes = jnp.dtype(out_dtype).itemsize

    # Resident budget: x/out double buffers + single-buffered weights +
    # f32 hidden chunk + f32 accumulator + biases.
    def _resident_bytes(dff_pad_):
        return (2 * tm * dm_pad * (xbytes + obytes)
                + 2 * wbytes * dm_pad * dff_pad_
                + 4 * tm * min(dff_pad_, ff_chunk)
                + 4 * tm * dm_pad
                + 8 * (dff_pad_ + dm_pad))

    if resident_weights is None:
        resident_weights = _resident_bytes(dff128) <= int(0.7 * vmem_cap)

    x2d = x.reshape(M, d_model)

    if resident_weights:
        # Pad d_ff so the in-kernel chunk loop divides it exactly.
        dff_pad = dff128 if dff128 <= ff_chunk else _round_up(dff128, ff_chunk)
        ff = min(ff_chunk, dff_pad)
        n_chunks = dff_pad // ff
        m_pad = _round_up(M, tm)

        x2p = _pad2d(x2d, m_pad, dm_pad)
        w1p = _pad2d(w1, dm_pad, dff_pad)
        w2p = _pad2d(w2, dff_pad, dm_pad)
        b1p = jnp.pad(b1, (0, dff_pad - d_ff))
        b2p = _pad2d(b2.reshape(1, d_model), 1, dm_pad)

        # Pre-chunk the weights/bias along d_ff (leading axis -> safe dynamic
        # indexing inside the kernel, no minor-dim dynamic slices).
        w1c = w1p.reshape(dm_pad, n_chunks, ff).transpose(1, 0, 2)
        b1c = b1p.reshape(n_chunks, 1, ff)
        w2c = w2p.reshape(n_chunks, ff, dm_pad)

        est = _resident_bytes(dff_pad)

        def _call(single_buffer_weights):
            # Constant-index weight/bias blocks -> single-buffer them.
            wkw = ({'pipeline_mode': pl.Buffered(1)}
                   if single_buffer_weights else {})
            extra = 0 if single_buffer_weights else 2 * wbytes * dm_pad * dff_pad
            vmem_limit = int(min(vmem_cap,
                                 max(32 * _MIB, 1.25 * (est + extra))))
            return pl.pallas_call(
                _ffn_resident_kernel,
                out_shape=jax.ShapeDtypeStruct((m_pad, dm_pad), out_dtype),
                grid_spec=pltpu.PrefetchScalarGridSpec(
                    num_scalar_prefetch=0,
                    grid=(m_pad // tm,),
                    in_specs=[
                        pl.BlockSpec((tm, dm_pad), lambda i: (i, 0)),      # x tile
                        pl.BlockSpec((n_chunks, dm_pad, ff),
                                     lambda i: (0, 0, 0), **wkw),          # W1
                        pl.BlockSpec((n_chunks, 1, ff),
                                     lambda i: (0, 0, 0), **wkw),          # b1
                        pl.BlockSpec((n_chunks, ff, dm_pad),
                                     lambda i: (0, 0, 0), **wkw),          # W2
                        pl.BlockSpec((1, dm_pad), lambda i: (0, 0), **wkw),  # b2
                    ],
                    out_specs=pl.BlockSpec((tm, dm_pad), lambda i: (i, 0)),
                ),
                # TODO(synk): on v7x, split the token axis across the two
                # TensorCores (CORE_PARALLEL / core_map) for a further ~2x;
                # plain "parallel" may leave one TC idle.
                compiler_params=pltpu.CompilerParams(
                    dimension_semantics=("parallel",),
                    vmem_limit_bytes=vmem_limit,
                ),
            )(x2p, w1c, b1c, w2c, b2p)

        try:
            out2d = _call(True)
        except Exception:
            out2d = _call(False)   # Buffered(1) unsupported -> default buffering
    else:
        # Streamed path: adaptively shrink (tff, tm) into the VMEM budget so
        # 64 MiB v7x never OOMs while keeping tm as large as possible.
        def _streamed_bytes(tm_, tff_):
            return (2 * tm_ * dm_pad * (xbytes + obytes)   # x/out double buffers
                    + 4 * wbytes * tff_ * dm_pad           # W1/W2 tiles (2x buf)
                    + 4 * tm_ * tff_                       # f32 hidden
                    + 4 * tm_ * dm_pad                     # f32 accumulator
                    + 8 * (tff_ + dm_pad))                 # biases

        budget = int(0.8 * vmem_cap)
        while _streamed_bytes(tm, tff) > budget and tff > 256:
            tff = max(256, _round_up(tff // 2, 128))
        while _streamed_bytes(tm, tff) > budget and tm > 256:
            tm = max(256, _round_up(tm // 2, 16))

        dff_pad = _round_up(d_ff, tff)
        m_pad = _round_up(M, tm)

        x2p = _pad2d(x2d, m_pad, dm_pad)
        w1p = _pad2d(w1, dm_pad, dff_pad)
        w2p = _pad2d(w2, dff_pad, dm_pad)
        b1p = jnp.pad(b1, (0, dff_pad - d_ff)).reshape(1, dff_pad)
        b2p = _pad2d(b2.reshape(1, d_model), 1, dm_pad)

        est = _streamed_bytes(tm, tff)
        vmem_limit = int(min(vmem_cap, max(32 * _MIB, 1.25 * est)))

        out2d = pl.pallas_call(
            _ffn_streamed_kernel,
            out_shape=jax.ShapeDtypeStruct((m_pad, dm_pad), out_dtype),
            grid_spec=pltpu.PrefetchScalarGridSpec(
                num_scalar_prefetch=0,
                grid=(m_pad // tm, dff_pad // tff),
                in_specs=[
                    pl.BlockSpec((tm, dm_pad), lambda i, k: (i, 0)),    # x tile
                    pl.BlockSpec((dm_pad, tff), lambda i, k: (0, k)),   # W1 tile
                    pl.BlockSpec((1, tff), lambda i, k: (0, k)),        # b1 tile
                    pl.BlockSpec((tff, dm_pad), lambda i, k: (k, 0)),   # W2 tile
                    pl.BlockSpec((1, dm_pad), lambda i, k: (0, 0)),     # b2
                ],
                out_specs=pl.BlockSpec((tm, dm_pad), lambda i, k: (i, 0)),
                scratch_shapes=[pltpu.VMEM((tm, dm_pad), jnp.float32)],
            ),
            compiler_params=pltpu.CompilerParams(
                dimension_semantics=("parallel", "arbitrary"),
                vmem_limit_bytes=vmem_limit,
            ),
        )(x2p, w1p, b1p, w2p, b2p)

    # TODO(synk): nn.Dropout is identity at inference; training-mode dropout
    # (pltpu.prng_seed + pltpu.stateful_bernoulli) is not implemented here.
    return out2d[:M, :d_model].reshape(B, S, d_model)


if __name__ == "__main__":
    # Shapes consistent with the module: batch=2, seq=8, d_model=32, d_ff=64.
    B, S, d_model, d_ff = 2, 8, 32, 64

    key = jax.random.PRNGKey(0)
    kx, kw1, kb1, kw2, kb2 = jax.random.split(key, 5)

    x = jax.random.normal(kx, (B, S, d_model), dtype=jnp.float32)

    # PyTorch Linear: y = x @ W.T + b ; weights stored pre-transposed (in, out).
    bound1 = 1.0 / (d_model ** 0.5)
    w1 = jax.random.uniform(kw1, (d_model, d_ff), jnp.float32, -bound1, bound1)
    b1 = jax.random.uniform(kb1, (d_ff,), jnp.float32, -bound1, bound1)
    bound2 = 1.0 / (d_ff ** 0.5)
    w2 = jax.random.uniform(kw2, (d_ff, d_model), jnp.float32, -bound2, bound2)
    b2 = jax.random.uniform(kb2, (d_model,), jnp.float32, -bound2, bound2)

    ref = jnp.maximum(x @ w1 + b1, 0.0) @ w2 + b2

    # 1) Default path: bf16 MXU operands, weights resident in VMEM.
    out_bf16 = feed_forward(x, w1, b1, w2, b2)
    jax.block_until_ready(out_bf16)
    assert out_bf16.shape == (B, S, d_model)
    assert jnp.allclose(out_bf16, ref, atol=5e-2, rtol=5e-2), "bf16 resident mismatch"

    # 2) Full-precision operands, resident path -> tight tolerance.
    out_f32 = feed_forward(x, w1, b1, w2, b2, compute_dtype=None)
    jax.block_until_ready(out_f32)
    assert jnp.allclose(out_f32, ref, atol=1e-5, rtol=1e-5), "f32 resident mismatch"

    # 3) Forced d_ff-streaming path (f32) -> tight tolerance.
    out_st = feed_forward(x, w1, b1, w2, b2, compute_dtype=None,
                          resident_weights=False)
    jax.block_until_ready(out_st)
    assert jnp.allclose(out_st, ref, atol=1e-5, rtol=1e-5), "f32 streamed mismatch"

    # Slightly larger shapes exercising multi-chunk / multi-k-step paths.
    B2, S2, dm2, dff2 = 2, 64, 128, 384
    k2 = jax.random.split(jax.random.PRNGKey(1), 5)
    x2 = jax.random.normal(k2[0], (B2, S2, dm2), dtype=jnp.float32)
    s1, s2 = 1.0 / (dm2 ** 0.5), 1.0 / (dff2 ** 0.5)
    w1b = jax.random.uniform(k2[1], (dm2, dff2), jnp.float32, -s1, s1)
    b1b = jax.random.uniform(k2[2], (dff2,), jnp.float32, -s1, s1)
    w2b = jax.random.uniform(k2[3], (dff2, dm2), jnp.float32, -s2, s2)
    b2b = jax.random.uniform(k2[4], (dm2,), jnp.float32, -s2, s2)
    ref2 = jnp.maximum(x2 @ w1b + b1b, 0.0) @ w2b + b2b

    # 4) Resident path with in-kernel d_ff chunking (3 chunks of 128).
    out_ch = feed_forward(x2, w1b, b1b, w2b, b2b, compute_dtype=None,
                          resident_weights=True, ff_chunk=128)
    jax.block_until_ready(out_ch)
    assert jnp.allclose(out_ch, ref2, atol=1e-4, rtol=1e-4), "chunked resident mismatch"

    # 5) Streamed path with multiple k steps (3 d_ff tiles) and 2 token tiles.
    out_st2 = feed_forward(x2, w1b, b1b, w2b, b2b, compute_dtype=None,
                           resident_weights=False, tff=128, tm=64)
    jax.block_until_ready(out_st2)
    assert jnp.allclose(out_st2, ref2, atol=1e-4, rtol=1e-4), "multi-k streamed mismatch"

    print("KERNEL_OK")
</pallas_src>

<mosaic_0001>
module attributes {stable_mosaic.version = 11 : i64} {
  func.func @_ffn_resident_kernel(%arg0: i32, %arg1: memref<16x128xbf16, #tpu.memory_space<vmem>>, %arg2: memref<1x128x128xbf16, #tpu.memory_space<vmem>>, %arg3: memref<1x1x128xf32, #tpu.memory_space<vmem>>, %arg4: memref<1x128x128xbf16, #tpu.memory_space<vmem>>, %arg5: memref<1x128xf32, #tpu.memory_space<vmem>>, %arg6: memref<16x128xf32, #tpu.memory_space<vmem>>) attributes {dimension_semantics = [#tpu.dimension_semantics<parallel>], iteration_bounds = array<i64: 1>, scalar_prefetch = 0 : i64, scratch_operands = 0 : i64, tpu.core_type = #tpu.core_type<tc>, window_params = [{transform_indices = @transform_0, window_bounds = array<i64: 16, 128>}, {pipeline_mode = #tpu.pipeline_mode<synchronous>, transform_indices = @transform_1, window_bounds = array<i64: 1, 128, 128>}, {pipeline_mode = #tpu.pipeline_mode<synchronous>, transform_indices = @transform_2, window_bounds = array<i64: 1, 1, 128>}, {pipeline_mode = #tpu.pipeline_mode<synchronous>, transform_indices = @transform_3, window_bounds = array<i64: 1, 128, 128>}, {pipeline_mode = #tpu.pipeline_mode<synchronous>, transform_indices = @transform_4, window_bounds = array<i64: 1, 128>}, {transform_indices = @transform_5, window_bounds = array<i64: 16, 128>}]} {
    %c0 = arith.constant 0 : index
    %c0_0 = arith.constant 0 : index
    %0 = vector.load %arg1[%c0, %c0_0] : memref<16x128xbf16, #tpu.memory_space<vmem>>, vector<16x128xbf16>
    %c0_1 = arith.constant 0 : index
    %c0_2 = arith.constant 0 : index
    %c0_3 = arith.constant 0 : index
    %1 = vector.load %arg2[%c0_1, %c0_2, %c0_3] : memref<1x128x128xbf16, #tpu.memory_space<vmem>>, vector<1x128x128xbf16>
    %2 = vector.shape_cast %1 : vector<1x128x128xbf16> to vector<128x128xbf16>
    %c0_4 = arith.constant 0 : index
    %c0_5 = arith.constant 0 : index
    %c0_6 = arith.constant 0 : index
    %3 = vector.load %arg3[%c0_4, %c0_5, %c0_6] : memref<1x1x128xf32, #tpu.memory_space<vmem>>, vector<1x1x128xf32>
    %4 = vector.shape_cast %3 : vector<1x1x128xf32> to vector<1x128xf32>
    %c0_7 = arith.constant 0 : index
    %c0_8 = arith.constant 0 : index
    %c0_9 = arith.constant 0 : index
    %5 = vector.load %arg4[%c0_7, %c0_8, %c0_9] : memref<1x128x128xbf16, #tpu.memory_space<vmem>>, vector<1x128x128xbf16>
    %6 = vector.shape_cast %5 : vector<1x128x128xbf16> to vector<128x128xbf16>
    %cst = arith.constant dense<0.000000e+00> : vector<16x128xf32>
    %7 = tpu.matmul %0, %2, %cst {dimension_numbers = #tpu.dot_dimension_numbers<[1], [0], [0], [1], [0, 0, 1, 1], [], []>} : vector<16x128xbf16>, vector<128x128xbf16>, vector<16x128xf32> -> vector<16x128xf32>
    %8 = vector.broadcast %4 : vector<1x128xf32> to vector<16x128xf32>
    %9 = arith.addf %7, %8 : vector<16x128xf32>
    %cst_10 = arith.constant 0.000000e+00 : f32
    %10 = vector.broadcast %cst_10 : f32 to vector<16x128xf32>
    %11 = arith.maximumf %9, %10 : vector<16x128xf32>
    %12 = arith.truncf %11 : vector<16x128xf32> to vector<16x128xbf16>
    %cst_11 = arith.constant dense<0.000000e+00> : vector<16x128xf32>
    %13 = tpu.matmul %12, %6, %cst_11 {dimension_numbers = #tpu.dot_dimension_numbers<[1], [0], [0], [1], [0, 0, 1, 1], [], []>} : vector<16x128xbf16>, vector<128x128xbf16>, vector<16x128xf32> -> vector<16x128xf32>
    %c0_12 = arith.constant 0 : index
    %c0_13 = arith.constant 0 : index
    %14 = vector.load %arg5[%c0_12, %c0_13] : memref<1x128xf32, #tpu.memory_space<vmem>>, vector<1x128xf32>
    %15 = vector.broadcast %14 : vector<1x128xf32> to vector<16x128xf32>
    %16 = arith.addf %13, %15 : vector<16x128xf32>
    %c0_14 = arith.constant 0 : index
    %c0_15 = arith.constant 0 : index
    %17 = vector.load %arg6[%c0_14, %c0_15] : memref<16x128xf32, #tpu.memory_space<vmem>>, vector<16x128xf32>
    tpu.vector_store %arg6[%c0_14, %c0_15], %16 {strides = array<i32>} : memref<16x128xf32, #tpu.memory_space<vmem>>, vector<16x128xf32>,
    return
  }
  func.func @transform_0(%arg0: i32) -> (i32, i32) {
    %c0_i32 = arith.constant 0 : i32
    %c0_i32_0 = arith.constant 0 : i32
    return %arg0, %c0_i32 : i32, i32
  }
  func.func @transform_1(%arg0: i32) -> (i32, i32, i32) {
    %c0_i32 = arith.constant 0 : i32
    %c0_i32_0 = arith.constant 0 : i32
    %c0_i32_1 = arith.constant 0 : i32
    %c0_i32_2 = arith.constant 0 : i32
    return %c0_i32, %c0_i32_0, %c0_i32_1 : i32, i32, i32
  }
  func.func @transform_2(%arg0: i32) -> (i32, i32, i32) {
    %c0_i32 = arith.constant 0 : i32
    %c0_i32_0 = arith.constant 0 : i32
    %c0_i32_1 = arith.constant 0 : i32
    %c0_i32_2 = arith.constant 0 : i32
    return %c0_i32, %c0_i32_0, %c0_i32_1 : i32, i32, i32
  }
  func.func @transform_3(%arg0: i32) -> (i32, i32, i32) {
    %c0_i32 = arith.constant 0 : i32
    %c0_i32_0 = arith.constant 0 : i32
    %c0_i32_1 = arith.constant 0 : i32
    %c0_i32_2 = arith.constant 0 : i32
    return %c0_i32, %c0_i32_0, %c0_i32_1 : i32, i32, i32
  }
  func.func @transform_4(%arg0: i32) -> (i32, i32) {
    %c0_i32 = arith.constant 0 : i32
    %c0_i32_0 = arith.constant 0 : i32
    %c0_i32_1 = arith.constant 0 : i32
    return %c0_i32, %c0_i32_0 : i32, i32
  }
  func.func @transform_5(%arg0: i32) -> (i32, i32) {
    %c0_i32 = arith.constant 0 : i32
    %c0_i32_0 = arith.constant 0 : i32
    return %arg0, %c0_i32 : i32, i32
  }
}

module attributes {stable_mosaic.version = 11 : i64} {
  func.func @_ffn_resident_kernel(%arg0: i32, %arg1: memref<16x128xbf16, #tpu.memory_space<vmem>>, %arg2: memref<1x128x128xbf16, #tpu.memory_space<vmem>>, %arg3: memref<1x1x128xf32, #tpu.memory_space<vmem>>, %arg4: memref<1x128x128xbf16, #tpu.memory_space<vmem>>, %arg5: memref<1x128xf32, #tpu.memory_space<vmem>>, %arg6: memref<16x128xf32, #tpu.memory_space<vmem>>) attributes {dimension_semantics = [#tpu.dimension_semantics<parallel>], iteration_bounds = array<i64: 1>, scalar_prefetch = 0 : i64, scratch_operands = 0 : i64, tpu.core_type = #tpu.core_type<tc>, window_params = [{transform_indices = @transform_0, window_bounds = array<i64: 16, 128>}, {pipeline_mode = #tpu.pipeline_mode<synchronous>, transform_indices = @transform_1, window_bounds = array<i64: 1, 128, 128>}, {pipeline_mode = #tpu.pipeline_mode<synchronous>, transform_indices = @transform_2, window_bounds = array<i64: 1, 1, 128>}, {pipeline_mode = #tpu.pipeline_mode<synchronous>, transform_indices = @transform_3, window_bounds = array<i64: 1, 128, 128>}, {pipeline_mode = #tpu.pipeline_mode<synchronous>, transform_indices = @transform_4, window_bounds = array<i64: 1, 128>}, {transform_indices = @transform_5, window_bounds = array<i64: 16, 128>}]} {
    %c0 = arith.constant 0 : index
    %c0_0 = arith.constant 0 : index
    %0 = vector.load %arg1[%c0, %c0_0] : memref<16x128xbf16, #tpu.memory_space<vmem>>, vector<16x128xbf16>
    %c0_1 = arith.constant 0 : index
    %c0_2 = arith.constant 0 : index
    %c0_3 = arith.constant 0 : index
    %1 = vector.load %arg2[%c0_1, %c0_2, %c0_3] : memref<1x128x128xbf16, #tpu.memory_space<vmem>>, vector<1x128x128xbf16>
    %2 = vector.shape_cast %1 : vector<1x128x128xbf16> to vector<128x128xbf16>
    %c0_4 = arith.constant 0 : index
    %c0_5 = arith.constant 0 : index
    %c0_6 = arith.constant 0 : index
    %3 = vector.load %arg3[%c0_4, %c0_5, %c0_6] : memref<1x1x128xf32, #tpu.memory_space<vmem>>, vector<1x1x128xf32>
    %4 = vector.shape_cast %3 : vector<1x1x128xf32> to vector<1x128xf32>
    %c0_7 = arith.constant 0 : index
    %c0_8 = arith.constant 0 : index
    %c0_9 = arith.constant 0 : index
    %5 = vector.load %arg4[%c0_7, %c0_8, %c0_9] : memref<1x128x128xbf16, #tpu.memory_space<vmem>>, vector<1x128x128xbf16>
    %6 = vector.shape_cast %5 : vector<1x128x128xbf16> to vector<128x128xbf16>
    %cst = arith.constant dense<0.000000e+00> : vector<16x128xf32>
    %7 = tpu.matmul %0, %2, %cst {dimension_numbers = #tpu.dot_dimension_numbers<[1], [0], [0], [1], [0, 0, 1, 1], [], []>} : vector<16x128xbf16>, vector<128x128xbf16>, vector<16x128xf32> -> vector<16x128xf32>
    %8 = vector.broadcast %4 : vector<1x128xf32> to vector<16x128xf32>
    %9 = arith.addf %7, %8 : vector<16x128xf32>
    %cst_10 = arith.constant 0.000000e+00 : f32
    %10 = vector.broadcast %cst_10 : f32 to vector<16x128xf32>
    %11 = arith.maximumf %9, %10 : vector<16x128xf32>
    %12 = arith.truncf %11 : vector<16x128xf32> to vector<16x128xbf16>
    %cst_11 = arith.constant dense<0.000000e+00> : vector<16x128xf32>
    %13 = tpu.matmul %12, %6, %cst_11 {dimension_numbers = #tpu.dot_dimension_numbers<[1], [0], [0], [1], [0, 0, 1, 1], [], []>} : vector<16x128xbf16>, vector<128x128xbf16>, vector<16x128xf32> -> vector<16x128xf32>
    %c0_12 = arith.constant 0 : index
    %c0_13 = arith.constant 0 : index
    %14 = vector.load %arg5[%c0_12, %c0_13] : memref<1x128xf32, #tpu.memory_space<vmem>>, vector<1x128xf32>
    %15 = vector.broadcast %14 : vector<1x128xf32> to vector<16x128xf32>
    %16 = arith.addf %13, %15 : vector<16x128xf32>
    %c0_14 = arith.constant 0 : index
    %c0_15 = arith.constant 0 : index
    %17 = vector.load %arg6[%c0_14, %c0_15] : memref<16x128xf32, #tpu.memory_space<vmem>>, vector<16x128xf32>
    tpu.vector_store %arg6[%c0_14, %c0_15], %16 {strides = array<i32>} : memref<16x128xf32, #tpu.memory_space<vmem>>, vector<16x128xf32>,
    return
  }
  func.func @transform_0(%arg0: i32) -> (i32, i32) {
    %c0_i32 = arith.constant 0 : i32
    %c0_i32_0 = arith.constant 0 : i32
    return %arg0, %c0_i32 : i32, i32
  }
  func.func @transform_1(%arg0: i32) -> (i32, i32, i32) {
    %c0_i32 = arith.constant 0 : i32
    %c0_i32_0 = arith.constant 0 : i32
    %c0_i32_1 = arith.constant 0 : i32
    %c0_i32_2 = arith.constant 0 : i32
    return %c0_i32, %c0_i32_0, %c0_i32_1 : i32, i32, i32
  }
  func.func @transform_2(%arg0: i32) -> (i32, i32, i32) {
    %c0_i32 = arith.constant 0 : i32
    %c0_i32_0 = arith.constant 0 : i32
    %c0_i32_1 = arith.constant 0 : i32
    %c0_i32_2 = arith.constant 0 : i32
    return %c0_i32, %c0_i32_0, %c0_i32_1 : i32, i32, i32
  }
  func.func @transform_3(%arg0: i32) -> (i32, i32, i32) {
    %c0_i32 = arith.constant 0 : i32
    %c0_i32_0 = arith.constant 0 : i32
    %c0_i32_1 = arith.constant 0 : i32
    %c0_i32_2 = arith.constant 0 : i32
    return %c0_i32, %c0_i32_0, %c0_i32_1 : i32, i32, i32
  }
  func.func @transform_4(%arg0: i32) -> (i32, i32) {
    %c0_i32 = arith.constant 0 : i32
    %c0_i32_0 = arith.constant 0 : i32
    %c0_i32_1 = arith.constant 0 : i32
    return %c0_i32, %c0_i32_0 : i32, i32
  }
  func.func @transform_5(%arg0: i32) -> (i32, i32) {
    %c0_i32 = arith.constant 0 : i32
    %c0_i32_0 = arith.constant 0 : i32
    return %arg0, %c0_i32 : i32, i32
  }
}

</mosaic_0001>

<bundles_post_ra>
// kernel: tpu_custom_call.1
= control target key start
LH: loop header
LB: loop body
LE: loop exit
PB: predicated region body
PF: predicated region fallthrough
CT: control target
= control target key end

     0   :  { %10 = vsyncpa [#allocation3], 0  ;;  %s626_s0 = inlined_call_operand.hbm [shape: bf16[16,128], index: 0, kind: input, shape index: {}]   ;;  %s627_s1 = inlined_call_operand.hbm [shape: bf16[1,128,128], index: 1, kind: input, shape index: {}]   ;;  %s628_s2 = inlined_call_operand.vmem [shape: f32[1,1,128], index: 2, kind: input, shape index: {}]   ;;  %s629_s3 = inlined_call_operand.hbm [shape: bf16[1,128,128], index: 3, kind: input, shape index: {}]   ;;  %s630_s4 = inlined_call_operand.vmem [shape: f32[1,128], index: 4, kind: input, shape index: {}]   ;;  %s631_s5 = inlined_call_operand.hbm [shape: f32[16,128], index: 5, kind: output, shape index: {}]  }
   0x1   :  { %11 = vsyncpa [#allocation6], 0 }
   0x2   :  { %12 = vsyncpa [#allocation4], 0  ;;  %s516_s18 = smov [#allocation5]   ;;  %s517_s20 = smov [#allocation2]  }
   0x3   :  { %s30_s19 = sshll.u32 %s516_s18, 4  ;;  %s18_s21 = sshll.u32 %s517_s20, 4  ;;  %s31_s19 = int_to_ptr.vmem [resolvable:$true] %s30_s19  ;;  %s556_s21 = int_to_ptr.vmem [resolvable:$true] %s18_s21 }
   0x4   :  { %s422_s24 = scalar_lea.hbm %s627_s1, 1024 }
   0x5   :  { %p423_p0 = scmp.ne.s32.totalorder %s627_s1, %s422_s24  ;;  %p426_p1 = scmp.lt.u32.totalorder %s422_s24, %s627_s1 }
   0x7   :  { %p428_p2 = pnand %p426_p1, %p423_p0 }
   0x9   :  { %431 = shalt.err (!%p428_p2)
}
   0xa   :  { %s432_s29 = scalar_lea.vmem %s31_s19, 1024  ;;  %p437_p4 = scmp.lt.s32.totalorder %s31_s19, %s31_s19 }
   0xb   :  { %p433_p3 = scmp.ne.s32.totalorder %s31_s19, %s432_s29  ;;  %p438_p5 = scmp.lt.s32.totalorder %s432_s29, %s432_s29 }
   0xd   :  { %p439_p6 = por %p438_p5, %p437_p4 }
   0xf   :  { %p440_p7 = pnand %p439_p6, %p433_p3 }
  0x11   :  { %443 = shalt.err (!%p440_p7)
}
  0x12   :  { %s518_s30 = smov 64   ;;  %s519_s6 = smov 4  }
  0x13   :  { %36 = dma.hbm_to_vmem [thread:$0]  %s627_s1, 1024, %s31_s19, [#allocation6], %s518_s30, %s518_s30, %s519_s6  }
  0x14   :  { %s444_s11 = scalar_lea.hbm %s626_s0, 128 }
  0x15   :  { %p445_p8 = scmp.ne.s32.totalorder %s626_s0, %s444_s11  ;;  %p448_p9 = scmp.lt.u32.totalorder %s444_s11, %s626_s0 }
  0x17   :  { %p450_p10 = pnand %p448_p9, %p445_p8 }
  0x19   :  { %453 = shalt.err (!%p450_p10)
}
  0x1a   :  { %s454_s16 = scalar_lea.vmem %s556_s21, 128  ;;  %p459_p12 = scmp.lt.s32.totalorder %s556_s21, %s556_s21 }
  0x1b   :  { %p455_p11 = scmp.ne.s32.totalorder %s556_s21, %s454_s16  ;;  %p460_p13 = scmp.lt.s32.totalorder %s454_s16, %s454_s16 }
  0x1d   :  { %p461_p0 = por %p460_p13, %p459_p12 }
  0x1f   :  { %p462_p1 = pnand %p461_p0, %p455_p11 }
  0x21   :  { %465 = shalt.err (!%p462_p1)
}
  0x22   :  { %24 = dma.hbm_to_vmem [thread:$0]  %s626_s0, 128, %s556_s21, [#allocation3], %s518_s30, %s518_s30, %s519_s6  }
  0x23   :  { %s520_s18 = smov [#allocation7]   ;;  %s466_s23 = scalar_lea.hbm %s629_s3, 1024 }
  0x24   :  { %s44_s19 = sshll.u32 %s520_s18, 4  ;;  %p467_p2 = scmp.ne.s32.totalorder %s629_s3, %s466_s23  ;;  %s45_s19 = int_to_ptr.vmem [resolvable:$true] %s44_s19 }
  0x25   :  { %p470_p3 = scmp.lt.u32.totalorder %s466_s23, %s629_s3 }
  0x27   :  { %p472_p4 = pnand %p470_p3, %p467_p2 }
  0x29   :  { %475 = shalt.err (!%p472_p4)
}
  0x2a   :  { %s476_s28 = scalar_lea.vmem %s45_s19, 1024  ;;  %p481_p6 = scmp.lt.s32.totalorder %s45_s19, %s45_s19 }
  0x2b   :  { %p477_p5 = scmp.ne.s32.totalorder %s45_s19, %s476_s28  ;;  %p482_p7 = scmp.lt.s32.totalorder %s476_s28, %s476_s28 }
  0x2d   :  { %p483_p8 = por %p482_p7, %p481_p6 }
  0x2f   :  { %p484_p9 = pnand %p483_p8, %p477_p5 }
  0x31   :  { %487 = shalt.err (!%p484_p9)
}
  0x32   :  { %50 = dma.hbm_to_vmem [thread:$0]  %s629_s3, 1024, %s45_s19, [#allocation6], %s518_s30, %s518_s30, %s519_s6  }
  0x33   :  { %510 = dma.done.wait [#allocation3], 128  }
  0x34   :  { %511 = vsyncadd [#allocation3], 4294967168 }
  0x35   :  { %512 = dma.done.wait [#allocation6], 2048  }
  0x36   :  { %513 = vsyncadd [#allocation6], 4294965248  ;;  %v521_v0 = vmov 0.0   ;;  %vm522_vm0 = vmmov 0   ;;  %v405_v1 = vld [vmem:[#allocation5] sm:$0xff]   ;;  %v406_v2 = vld [vmem:[#allocation5 + $0x8] sm:$0xff]  }
  0x37   :  { %355 = vmatprep.subr.bf16.mxu0 %v521_v0  ;;  %371 = vmatprep.mubr.msk.bf16.mxu0 %vm522_vm0, %v521_v0  ;;  %v407_v3 = vld [vmem:[#allocation5 + $0x10] sm:$0xff]   ;;  %v414_v4 = vld [vmem:[#allocation7] sm:$0xff]   ;;  %v408_v5 = vld [vmem:[#allocation5 + $0x18] sm:$0xff]   ;;  %s523_s7 = smov [#allocation8]  }
  0x38   :  { %375 = vmatprep.subr.bf16.mxu1 %v521_v0  ;;  %391 = vmatprep.mubr.msk.bf16.mxu1 %vm522_vm0, %v521_v0  ;;  %v415_v6 = vld [vmem:[#allocation7 + $0x8] sm:$0xff]   ;;  %v409_v7 = vld [vmem:[#allocation5 + $0x20] sm:$0xff]   ;;  %v416_v8 = vld [vmem:[#allocation7 + $0x10] sm:$0xff]   ;;  %s305_s8 = sshll.u32 %s523_s7, 4  ;;  %s306_s8 = int_to_ptr.vmem [resolvable:$true] %s305_s8 }
  0x39   :  { %356 = vmatpush3.bf16.msra.mxu0 %v405_v1  ;;  %376 = vmatpush3.bf16.msra.mxu1 %v414_v4  ;;  %v410_v9 = vld [vmem:[#allocation5 + $0x28] sm:$0xff]   ;;  %v417_v10 = vld [vmem:[#allocation7 + $0x18] sm:$0xff]   ;;  %v411_v11 = vld [vmem:[#allocation5 + $0x30] sm:$0xff]   ;;  %p493_p11 = scmp.lt.s32.totalorder %s306_s8, %s306_s8 }
  0x3a   :  { %357 = vmatprep.subr.bf16.mxu0 %v521_v0  ;;  %377 = vmatprep.subr.bf16.mxu1 %v521_v0  ;;  %v418_v12 = vld [vmem:[#allocation7 + $0x20] sm:$0xff]   ;;  %v412_v13 = vld [vmem:[#allocation5 + $0x38] sm:$0xff]   ;;  %v419_v14 = vld [vmem:[#allocation7 + $0x28] sm:$0xff]  }
  0x3b   :  { %v413_v15 = vld [vmem:[#allocation2] sm:$0xff]   ;;  %v420_v16 = vld [vmem:[#allocation7 + $0x30] sm:$0xff]  }
  0x3c   :  { %v421_v17 = vld [vmem:[#allocation7 + $0x38] sm:$0xff]  }
  0x3d   :  { %358 = vmatpush3.bf16.msra.mxu0 %v406_v2  ;;  %378 = vmatpush3.bf16.msra.mxu1 %v415_v6  ;;  %v318_v18 = vld [vmem:[%s628_s2] ss:$0 sm:$0xff]  ;;  %s488_s2 = scalar_lea.vmem %s306_s8, 256 }
  0x3e   :  { %359 = vmatprep.subr.bf16.mxu0 %v521_v0  ;;  %379 = vmatprep.subr.bf16.mxu1 %v521_v0  ;;  %v328_v28 = vld [vmem:[%s630_s4] ss:$0 sm:$0xff]  ;;  %p489_p10 = scmp.ne.s32.totalorder %s306_s8, %s488_s2  ;;  %p494_p12 = scmp.lt.s32.totalorder %s488_s2, %s488_s2 }
  0x40   :  { %p495_p13 = por %p494_p12, %p493_p11 }
  0x41   :  { %360 = vmatpush3.bf16.msra.mxu0 %v407_v3  ;;  %380 = vmatpush3.bf16.msra.mxu1 %v416_v8 }
  0x42   :  { %361 = vmatprep.subr.bf16.mxu0 %v521_v0  ;;  %381 = vmatprep.subr.bf16.mxu1 %v521_v0  ;;  %p496_p0 = pnand %p495_p13, %p489_p10 }
  0x45   :  { %362 = vmatpush3.bf16.msra.mxu0 %v408_v5  ;;  %382 = vmatpush3.bf16.msra.mxu1 %v417_v10 }
  0x46   :  { %363 = vmatprep.subr.bf16.mxu0 %v521_v0  ;;  %383 = vmatprep.subr.bf16.mxu1 %v521_v0 }
  0x49   :  { %364 = vmatpush3.bf16.msra.mxu0 %v409_v7  ;;  %384 = vmatpush3.bf16.msra.mxu1 %v418_v12 }
  0x4a   :  { %365 = vmatprep.subr.bf16.mxu0 %v521_v0  ;;  %385 = vmatprep.subr.bf16.mxu1 %v521_v0 }
  0x4d   :  { %366 = vmatpush3.bf16.msra.mxu0 %v410_v9  ;;  %386 = vmatpush3.bf16.msra.mxu1 %v419_v14 }
  0x4e   :  { %367 = vmatprep.subr.bf16.mxu0 %v521_v0  ;;  %387 = vmatprep.subr.bf16.mxu1 %v521_v0 }
  0x51   :  { %368 = vmatpush3.bf16.msra.mxu0 %v411_v11  ;;  %388 = vmatpush3.bf16.msra.mxu1 %v420_v16 }
  0x52   :  { %369 = vmatprep.subr.bf16.mxu0 %v521_v0  ;;  %389 = vmatprep.subr.bf16.mxu1 %v521_v0 }
  0x55   :  { %370 = vmatpush3.bf16.msra.mxu0 %v412_v13  ;;  %390 = vmatpush3.bf16.msra.mxu1 %v421_v17 }
  0x58   :  { %372 = vmatmul.mubr.bf16.vlgmr.msra.gmra.mrb[0].mxu0 %v413_v15 }
 0x12b   :  { %v192_v19 = vpop.f32.mrb[0].mxu0 }
 0x12c   :  { %v193_v20 = vadd.f32 %v318_v18, %v192_v19  ;;  %v373_v21 = vpop.f32.mrb[1].mxu0 }
 0x12d   :  { %v195_v22 = vpop.f32.mrb[2].mxu0 }
 0x12e   :  { %v196_v23 = vadd.f32 %v318_v18, %v195_v22  ;;  %v374_v24 = vpop.f32.mrb[3].mxu0  ;;  %v199_v25 = vmax.f32 %v193_v20, 0.0 }
 0x130   :  { %v200_v26 = vmax.f32 %v196_v23, 0.0 }
 0x132   :  { %v201_v27 = vpack.c.bf16 %v200_v26, %v199_v25 }
 0x134   :  { %392 = vmatmul.mubr.bf16.vlgmr.msra.gmra.mrb[0].mxu1 %v201_v27 }
 0x207   :  { %v291_v29 = vpop.f32.mrb[0].mxu1 }
 0x208   :  { %v292_v30 = vadd.f32 %v328_v28, %v291_v29  ;;  %v393_v31 = vpop.f32.mrb[1].mxu1 }
 0x209   :  { %v294_v32 = vpop.f32.mrb[2].mxu1 }
 0x20a   :  { %298 = vst [vmem:[#allocation8] sm:$0xff] %v292_v30  ;;  %v295_v33 = vadd.f32 %v328_v28, %v294_v32  ;;  %v394_v34 = vpop.f32.mrb[3].mxu1 }
 0x20c   :  { %299 = vst [vmem:[#allocation8 + $0x8] sm:$0xff] %v295_v33 }
 0x20d   :  { %499 = shalt.err (!%p496_p0)
}
 0x20e   :  { %s500_s10 = scalar_lea.hbm %s631_s5, 256 }
 0x20f   :  { %p501_p1 = scmp.ne.s32.totalorder %s631_s5, %s500_s10  ;;  %p504_p2 = scmp.lt.u32.totalorder %s500_s10, %s631_s5 }
 0x211   :  { %p506_p3 = pnand %p504_p2, %p501_p1 }
 0x213   :  { %509 = shalt.err (!%p506_p3)
}
 0x214   :  { %s524_s15 = smov 128   ;;  %s525_s16 = smov 8  }
 0x215   :  { %311 = dma.vmem_to_hbm [thread:$0]  %s306_s8, 256, %s631_s5, [#allocation4], %s524_s15, %s524_s15, %s525_s16  }
 0x216   :  { %514 = dma.done.wait [#allocation4], 256  }
 0x217   :  { %515 = vsyncadd [#allocation4], 4294967040 }
 0x218   :  { %315 = vsyncpa [#allocation3], 1 }
 0x219   :  { %316 = vsyncpa [#allocation6], 1 }
 0x21a   :  { %317 = vsyncpa [#allocation4], 1 }

// kernel: tpu_custom_call.1
= control target key start
LH: loop header
LB: loop body
LE: loop exit
PB: predicated region body
PF: predicated region fallthrough
CT: control target
= control target key end

     0   :  { %10 = vsyncpa [#allocation3], 0  ;;  %s626_s0 = inlined_call_operand.hbm [shape: bf16[16,128], index: 0, kind: input, shape index: {}]   ;;  %s627_s1 = inlined_call_operand.hbm [shape: bf16[1,128,128], index: 1, kind: input, shape index: {}]   ;;  %s628_s2 = inlined_call_operand.vmem [shape: f32[1,1,128], index: 2, kind: input, shape index: {}]   ;;  %s629_s3 = inlined_call_operand.hbm [shape: bf16[1,128,128], index: 3, kind: input, shape index: {}]   ;;  %s630_s4 = inlined_call_operand.vmem [shape: f32[1,128], index: 4, kind: input, shape index: {}]   ;;  %s631_s5 = inlined_call_operand.hbm [shape: f32[16,128], index: 5, kind: output, shape index: {}]  }
   0x1   :  { %11 = vsyncpa [#allocation6], 0 }
   0x2   :  { %12 = vsyncpa [#allocation4], 0  ;;  %s516_s18 = smov [#allocation5]   ;;  %s517_s20 = smov [#allocation2]  }
   0x3   :  { %s30_s19 = sshll.u32 %s516_s18, 4  ;;  %s18_s21 = sshll.u32 %s517_s20, 4  ;;  %s31_s19 = int_to_ptr.vmem [resolvable:$true] %s30_s19  ;;  %s556_s21 = int_to_ptr.vmem [resolvable:$true] %s18_s21 }
   0x4   :  { %s422_s24 = scalar_lea.hbm %s627_s1, 1024 }
   0x5   :  { %p423_p0 = scmp.ne.s32.totalorder %s627_s1, %s422_s24  ;;  %p426_p1 = scmp.lt.u32.totalorder %s422_s24, %s627_s1 }
   0x7   :  { %p428_p2 = pnand %p426_p1, %p423_p0 }
   0x9   :  { %431 = shalt.err (!%p428_p2)
}
   0xa   :  { %s432_s29 = scalar_lea.vmem %s31_s19, 1024  ;;  %p437_p4 = scmp.lt.s32.totalorder %s31_s19, %s31_s19 }
   0xb   :  { %p433_p3 = scmp.ne.s32.totalorder %s31_s19, %s432_s29  ;;  %p438_p5 = scmp.lt.s32.totalorder %s432_s29, %s432_s29 }
   0xd   :  { %p439_p6 = por %p438_p5, %p437_p4 }
   0xf   :  { %p440_p7 = pnand %p439_p6, %p433_p3 }
  0x11   :  { %443 = shalt.err (!%p440_p7)
}
  0x12   :  { %s518_s30 = smov 64   ;;  %s519_s6 = smov 4  }
  0x13   :  { %36 = dma.hbm_to_vmem [thread:$0]  %s627_s1, 1024, %s31_s19, [#allocation6], %s518_s30, %s518_s30, %s519_s6  }
  0x14   :  { %s444_s11 = scalar_lea.hbm %s626_s0, 128 }
  0x15   :  { %p445_p8 = scmp.ne.s32.totalorder %s626_s0, %s444_s11  ;;  %p448_p9 = scmp.lt.u32.totalorder %s444_s11, %s626_s0 }
  0x17   :  { %p450_p10 = pnand %p448_p9, %p445_p8 }
  0x19   :  { %453 = shalt.err (!%p450_p10)
}
  0x1a   :  { %s454_s16 = scalar_lea.vmem %s556_s21, 128  ;;  %p459_p12 = scmp.lt.s32.totalorder %s556_s21, %s556_s21 }
  0x1b   :  { %p455_p11 = scmp.ne.s32.totalorder %s556_s21, %s454_s16  ;;  %p460_p13 = scmp.lt.s32.totalorder %s454_s16, %s454_s16 }
  0x1d   :  { %p461_p0 = por %p460_p13, %p459_p12 }
  0x1f   :  { %p462_p1 = pnand %p461_p0, %p455_p11 }
  0x21   :  { %465 = shalt.err (!%p462_p1)
}
  0x22   :  { %24 = dma.hbm_to_vmem [thread:$0]  %s626_s0, 128, %s556_s21, [#allocation3], %s518_s30, %s518_s30, %s519_s6  }
  0x23   :  { %s520_s18 = smov [#allocation7]   ;;  %s466_s23 = scalar_lea.hbm %s629_s3, 1024 }
  0x24   :  { %s44_s19 = sshll.u32 %s520_s18, 4  ;;  %p467_p2 = scmp.ne.s32.totalorder %s629_s3, %s466_s23  ;;  %s45_s19 = int_to_ptr.vmem [resolvable:$true] %s44_s19 }
  0x25   :  { %p470_p3 = scmp.lt.u32.totalorder %s466_s23, %s629_s3 }
  0x27   :  { %p472_p4 = pnand %p470_p3, %p467_p2 }
  0x29   :  { %475 = shalt.err (!%p472_p4)
}
  0x2a   :  { %s476_s28 = scalar_lea.vmem %s45_s19, 1024  ;;  %p481_p6 = scmp.lt.s32.totalorder %s45_s19, %s45_s19 }
  0x2b   :  { %p477_p5 = scmp.ne.s32.totalorder %s45_s19, %s476_s28  ;;  %p482_p7 = scmp.lt.s32.totalorder %s476_s28, %s476_s28 }
  0x2d   :  { %p483_p8 = por %p482_p7, %p481_p6 }
  0x2f   :  { %p484_p9 = pnand %p483_p8, %p477_p5 }
  0x31   :  { %487 = shalt.err (!%p484_p9)
}
  0x32   :  { %50 = dma.hbm_to_vmem [thread:$0]  %s629_s3, 1024, %s45_s19, [#allocation6], %s518_s30, %s518_s30, %s519_s6  }
  0x33   :  { %510 = dma.done.wait [#allocation3], 128  }
  0x34   :  { %511 = vsyncadd [#allocation3], 4294967168 }
  0x35   :  { %512 = dma.done.wait [#allocation6], 2048  }
  0x36   :  { %513 = vsyncadd [#allocation6], 4294965248  ;;  %v521_v0 = vmov 0.0   ;;  %vm522_vm0 = vmmov 0   ;;  %v405_v1 = vld [vmem:[#allocation5] sm:$0xff]   ;;  %v406_v2 = vld [vmem:[#allocation5 + $0x8] sm:$0xff]  }
  0x37   :  { %355 = vmatprep.subr.bf16.mxu0 %v521_v0  ;;  %371 = vmatprep.mubr.msk.bf16.mxu0 %vm522_vm0, %v521_v0  ;;  %v407_v3 = vld [vmem:[#allocation5 + $0x10] sm:$0xff]   ;;  %v414_v4 = vld [vmem:[#allocation7] sm:$0xff]   ;;  %v408_v5 = vld [vmem:[#allocation5 + $0x18] sm:$0xff]   ;;  %s523_s7 = smov [#allocation8]  }
  0x38   :  { %375 = vmatprep.subr.bf16.mxu1 %v521_v0  ;;  %391 = vmatprep.mubr.msk.bf16.mxu1 %vm522_vm0, %v521_v0  ;;  %v415_v6 = vld [vmem:[#allocation7 + $0x8] sm:$0xff]   ;;  %v409_v7 = vld [vmem:[#allocation5 + $0x20] sm:$0xff]   ;;  %v416_v8 = vld [vmem:[#allocation7 + $0x10] sm:$0xff]   ;;  %s305_s8 = sshll.u32 %s523_s7, 4  ;;  %s306_s8 = int_to_ptr.vmem [resolvable:$true] %s305_s8 }
  0x39   :  { %356 = vmatpush3.bf16.msra.mxu0 %v405_v1  ;;  %376 = vmatpush3.bf16.msra.mxu1 %v414_v4  ;;  %v410_v9 = vld [vmem:[#allocation5 + $0x28] sm:$0xff]   ;;  %v417_v10 = vld [vmem:[#allocation7 + $0x18] sm:$0xff]   ;;  %v411_v11 = vld [vmem:[#allocation5 + $0x30] sm:$0xff]   ;;  %p493_p11 = scmp.lt.s32.totalorder %s306_s8, %s306_s8 }
  0x3a   :  { %357 = vmatprep.subr.bf16.mxu0 %v521_v0  ;;  %377 = vmatprep.subr.bf16.mxu1 %v521_v0  ;;  %v418_v12 = vld [vmem:[#allocation7 + $0x20] sm:$0xff]   ;;  %v412_v13 = vld [vmem:[#allocation5 + $0x38] sm:$0xff]   ;;  %v419_v14 = vld [vmem:[#allocation7 + $0x28] sm:$0xff]  }
  0x3b   :  { %v413_v15 = vld [vmem:[#allocation2] sm:$0xff]   ;;  %v420_v16 = vld [vmem:[#allocation7 + $0x30] sm:$0xff]  }
  0x3c   :  { %v421_v17 = vld [vmem:[#allocation7 + $0x38] sm:$0xff]  }
  0x3d   :  { %358 = vmatpush3.bf16.msra.mxu0 %v406_v2  ;;  %378 = vmatpush3.bf16.msra.mxu1 %v415_v6  ;;  %v318_v18 = vld [vmem:[%s628_s2] ss:$0 sm:$0xff]  ;;  %s488_s2 = scalar_lea.vmem %s306_s8, 256 }
  0x3e   :  { %359 = vmatprep.subr.bf16.mxu0 %v521_v0  ;;  %379 = vmatprep.subr.bf16.mxu1 %v521_v0  ;;  %v328_v28 = vld [vmem:[%s630_s4] ss:$0 sm:$0xff]  ;;  %p489_p10 = scmp.ne.s32.totalorder %s306_s8, %s488_s2  ;;  %p494_p12 = scmp.lt.s32.totalorder %s488_s2, %s488_s2 }
  0x40   :  { %p495_p13 = por %p494_p12, %p493_p11 }
  0x41   :  { %360 = vmatpush3.bf16.msra.mxu0 %v407_v3  ;;  %380 = vmatpush3.bf16.msra.mxu1 %v416_v8 }
  0x42   :  { %361 = vmatprep.subr.bf16.mxu0 %v521_v0  ;;  %381 = vmatprep.subr.bf16.mxu1 %v521_v0  ;;  %p496_p0 = pnand %p495_p13, %p489_p10 }
  0x45   :  { %362 = vmatpush3.bf16.msra.mxu0 %v408_v5  ;;  %382 = vmatpush3.bf16.msra.mxu1 %v417_v10 }
  0x46   :  { %363 = vmatprep.subr.bf16.mxu0 %v521_v0  ;;  %383 = vmatprep.subr.bf16.mxu1 %v521_v0 }
  0x49   :  { %364 = vmatpush3.bf16.msra.mxu0 %v409_v7  ;;  %384 = vmatpush3.bf16.msra.mxu1 %v418_v12 }
  0x4a   :  { %365 = vmatprep.subr.bf16.mxu0 %v521_v0  ;;  %385 = vmatprep.subr.bf16.mxu1 %v521_v0 }
  0x4d   :  { %366 = vmatpush3.bf16.msra.mxu0 %v410_v9  ;;  %386 = vmatpush3.bf16.msra.mxu1 %v419_v14 }
  0x4e   :  { %367 = vmatprep.subr.bf16.mxu0 %v521_v0  ;;  %387 = vmatprep.subr.bf16.mxu1 %v521_v0 }
  0x51   :  { %368 = vmatpush3.bf16.msra.mxu0 %v411_v11  ;;  %388 = vmatpush3.bf16.msra.mxu1 %v420_v16 }
  0x52   :  { %369 = vmatprep.subr.bf16.mxu0 %v521_v0  ;;  %389 = vmatprep.subr.bf16.mxu1 %v521_v0 }
  0x55   :  { %370 = vmatpush3.bf16.msra.mxu0 %v412_v13  ;;  %390 = vmatpush3.bf16.msra.mxu1 %v421_v17 }
  0x58   :  { %372 = vmatmul.mubr.bf16.vlgmr.msra.gmra.mrb[0].mxu0 %v413_v15 }
 0x12b   :  { %v192_v19 = vpop.f32.mrb[0].mxu0 }
 0x12c   :  { %v193_v20 = vadd.f32 %v318_v18, %v192_v19  ;;  %v373_v21 = vpop.f32.mrb[1].mxu0 }
 0x12d   :  { %v195_v22 = vpop.f32.mrb[2].mxu0 }
 0x12e   :  { %v196_v23 = vadd.f32 %v318_v18, %v195_v22  ;;  %v374_v24 = vpop.f32.mrb[3].mxu0  ;;  %v199_v25 = vmax.f32 %v193_v20, 0.0 }
 0x130   :  { %v200_v26 = vmax.f32 %v196_v23, 0.0 }
 0x132   :  { %v201_v27 = vpack.c.bf16 %v200_v26, %v199_v25 }
 0x134   :  { %392 = vmatmul.mubr.bf16.vlgmr.msra.gmra.mrb[0].mxu1 %v201_v27 }
 0x207   :  { %v291_v29 = vpop.f32.mrb[0].mxu1 }
 0x208   :  { %v292_v30 = vadd.f32 %v328_v28, %v291_v29  ;;  %v393_v31 = vpop.f32.mrb[1].mxu1 }
 0x209   :  { %v294_v32 = vpop.f32.mrb[2].mxu1 }
 0x20a   :  { %298 = vst [vmem:[#allocation8] sm:$0xff] %v292_v30  ;;  %v295_v33 = vadd.f32 %v328_v28, %v294_v32  ;;  %v394_v34 = vpop.f32.mrb[3].mxu1 }
 0x20c   :  { %299 = vst [vmem:[#allocation8 + $0x8] sm:$0xff] %v295_v33 }
 0x20d   :  { %499 = shalt.err (!%p496_p0)
}
 0x20e   :  { %s500_s10 = scalar_lea.hbm %s631_s5, 256 }
 0x20f   :  { %p501_p1 = scmp.ne.s32.totalorder %s631_s5, %s500_s10  ;;  %p504_p2 = scmp.lt.u32.totalorder %s500_s10, %s631_s5 }
 0x211   :  { %p506_p3 = pnand %p504_p2, %p501_p1 }
 0x213   :  { %509 = shalt.err (!%p506_p3)
}
 0x214   :  { %s524_s15 = smov 128   ;;  %s525_s16 = smov 8  }
 0x215   :  { %311 = dma.vmem_to_hbm [thread:$0]  %s306_s8, 256, %s631_s5, [#allocation4], %s524_s15, %s524_s15, %s525_s16  }
 0x216   :  { %514 = dma.done.wait [#allocation4], 256  }
 0x217   :  { %515 = vsyncadd [#allocation4], 4294967040 }
 0x218   :  { %315 = vsyncpa [#allocation3], 1 }
 0x219   :  { %316 = vsyncpa [#allocation6], 1 }
 0x21a   :  { %317 = vsyncpa [#allocation4], 1 }

</bundles_post_ra>
